<compile_context>
chip_gen: v5e
topology: v5e:2x2
jax: 0.10.0
libtpu: 0.0.40
codegen_flags: <defaults>
</compile_context>

<pallas_src>
import functools

import jax
import jax.numpy as jnp
from jax.experimental import pallas as pl
from jax.experimental.pallas import tpu as pltpu

LANE = 128
SUBLANE = 8
_NEG_INIT = float(jnp.finfo(jnp.float32).min)   # finite stand-in for -inf


def _softplus(x):
    # Matches torch.nn.Softplus (beta=1, threshold=20).
    return jnp.where(x > 20.0, x, jnp.log1p(jnp.exp(jnp.minimum(x, 20.0))))


def _circle_loss_kernel(lens_ref, sp_ref, sn_ref, out_ref,
                        mp_sc, lp_sc, mn_sc, ln_sc, iota_sc, *,
                        m, gamma, rows_p, rows_n, max_rows):
    i = pl.program_id(0)

    @pl.when(i == 0)
    def _init():
        neg = jnp.full((1, LANE), _NEG_INIT, jnp.float32)
        zero = jnp.zeros((1, LANE), jnp.float32)
        mp_sc[...] = neg
        mn_sc[...] = neg
        lp_sc[...] = zero
        ln_sc[...] = zero
        # Block-local linear element index, built once and reused every step.
        iota_sc[...] = (
            jax.lax.broadcasted_iota(jnp.int32, (max_rows, LANE), 0) * LANE
            + jax.lax.broadcasted_iota(jnp.int32, (max_rows, LANE), 1))

    def online_lse_update(logit, valid, m_sc, s_sc):
        # Streaming logsumexp with per-lane state: reduce along the sublane
        # axis only (VPU + one sublane collapse per reduction); the 128 lanes
        # are merged once, in finalize.  Padded slots are masked via select,
        # and the finite _NEG_INIT init avoids any -inf - (-inf) NaNs for
        # lanes that never see a valid element.
        neg = jnp.float32(_NEG_INIT)
        bmax = jnp.max(jnp.where(valid, logit, neg), axis=0, keepdims=True)
        m_old = m_sc[...]
        m_new = jnp.maximum(m_old, bmax)
        alpha = jnp.exp(m_old - m_new)
        p = jnp.where(valid, jnp.exp(logit - m_new), 0.0)
        s_sc[...] = s_sc[...] * alpha + jnp.sum(p, axis=0, keepdims=True)
        m_sc[...] = m_new

    n_p = lens_ref[0]
    n_n = lens_ref[1]
    base_p = i * (rows_p * LANE)
    base_n = i * (rows_n * LANE)

    @pl.when(base_p < n_p)          # this step holds >= 1 valid sp element
    def _update_p():
        sp = sp_ref[...]
        valid = iota_sc[pl.ds(0, rows_p), :] < (n_p - base_p)
        ap = jnp.maximum(-sp + (1.0 + m), 0.0)
        logit_p = -ap * (sp - (1.0 - m)) * gamma
        online_lse_update(logit_p, valid, mp_sc, lp_sc)

    @pl.when(base_n < n_n)          # this step holds >= 1 valid sn element
    def _update_n():
        sn = sn_ref[...]
        valid = iota_sc[pl.ds(0, rows_n), :] < (n_n - base_n)
        an = jnp.maximum(sn + m, 0.0)
        logit_n = an * (sn - m) * gamma
        online_lse_update(logit_n, valid, mn_sc, ln_sc)

    @pl.when(i == pl.num_programs(0) - 1)
    def _finalize():
        def lane_lse(m_sc, s_sc):
            mv = m_sc[...]                                       # (1, 128)
            sv = s_sc[...]
            gmax = jnp.max(mv, axis=1, keepdims=True)            # one lane reduce
            tot = jnp.sum(sv * jnp.exp(mv - gmax), axis=1, keepdims=True)
            return gmax + jnp.log(tot)                           # (1, 1)
        out_ref[...] = _softplus(lane_lse(mn_sc, ln_sc) + lane_lse(mp_sc, lp_sc))


def _make_index_map(nblocks):
    def idx(i, lens):
        return (jnp.minimum(i, nblocks - 1), 0)
    return idx


def circle_loss(sp, sn, size_normed_feature, *, m=0.8, gamma=80.0, lam=1.0,
                block_rows=2048):
    """CircleLoss forward; sp / sn are 1-D similarity-score vectors."""
    block_rows = max(SUBLANE, (int(block_rows) // SUBLANE) * SUBLANE)

    def prep(x):
        x = jnp.asarray(x, jnp.float32).reshape(-1)
        n = x.shape[0]
        rows_min = max(pl.cdiv(n, SUBLANE * LANE), 1) * SUBLANE  # multiple of 8
        br = min(block_rows, rows_min)                           # right-sized block
        nblk = pl.cdiv(rows_min, br)
        rows = nblk * br                                         # pad <= one block
        x = jnp.pad(x, (0, rows * LANE - n)).reshape(rows, LANE)
        return x, n, br, nblk

    sp_p, n_p, br_p, gp = prep(sp)
    sn_p, n_n, br_n, gn = prep(sn)
    grid = max(gp, gn)
    max_rows = max(br_p, br_n)

    lens = jnp.array([n_p, n_n], jnp.int32)

    kernel = functools.partial(_circle_loss_kernel, m=float(m), gamma=float(gamma),
                               rows_p=br_p, rows_n=br_n, max_rows=max_rows)

    # Double-buffered inputs + iota scratch + accumulators (+ slack).
    vmem_bytes = ((br_p + br_n) * LANE * 4 * 2
                  + max_rows * LANE * 4
                  + 4 * SUBLANE * LANE * 4
                  + (1 << 16))
    cp_kwargs = dict(dimension_semantics=("arbitrary",))
    if vmem_bytes > (12 << 20):      # only override when the v5e scoped default
        cp_kwargs["vmem_limit_bytes"] = int(min(vmem_bytes * 5 // 4, 100 << 20))

    loss = pl.pallas_call(
        kernel,
        out_shape=jax.ShapeDtypeStruct((1, 1), jnp.float32),
        grid_spec=pltpu.PrefetchScalarGridSpec(
            num_scalar_prefetch=1,                 # lens (i32[2]) in SMEM
            grid=(grid,),
            in_specs=[
                pl.BlockSpec((br_p, LANE), _make_index_map(gp)),
                pl.BlockSpec((br_n, LANE), _make_index_map(gn)),
            ],
            out_specs=pl.BlockSpec((1, 1), lambda i, lens: (0, 0)),
            scratch_shapes=[
                pltpu.VMEM((1, LANE), jnp.float32),      # per-lane running max (pos)
                pltpu.VMEM((1, LANE), jnp.float32),      # per-lane running sum (pos)
                pltpu.VMEM((1, LANE), jnp.float32),      # per-lane running max (neg)
                pltpu.VMEM((1, LANE), jnp.float32),      # per-lane running sum (neg)
                pltpu.VMEM((max_rows, LANE), jnp.int32), # block-local linear iota
            ],
        ),
        compiler_params=pltpu.CompilerParams(**cp_kwargs),
    )(lens, sp_p, sn_p)[0, 0]

    size = jnp.asarray(size_normed_feature, jnp.float32)
    return lam * jnp.maximum(loss / size, 0.0)


def circle_loss_ref(sp, sn, size_normed_feature, *, m=0.8, gamma=80.0, lam=1.0):
    # Pure-JAX reference mirroring the PyTorch forward.
    sp = sp.astype(jnp.float32)
    sn = sn.astype(jnp.float32)
    ap = jnp.maximum(-sp + 1 + m, 0.0)
    an = jnp.maximum(sn + m, 0.0)
    logit_p = -ap * (sp - (1 - m)) * gamma
    logit_n = an * (sn - m) * gamma
    loss = jax.nn.softplus(jax.nn.logsumexp(logit_n, axis=0)
                           + jax.nn.logsumexp(logit_p, axis=0))
    return lam * jnp.maximum(loss / size_normed_feature, 0.0)


if __name__ == "__main__":
    key = jax.random.PRNGKey(0)
    k1, k2 = jax.random.split(key)
    # Small synthetic similarity vectors (cosine-like scores in [-1, 1]).
    sp = jax.random.uniform(k1, (300,), jnp.float32, minval=-1.0, maxval=1.0)
    sn = jax.random.uniform(k2, (3000,), jnp.float32, minval=-1.0, maxval=1.0)
    size_normed_feature = jnp.float32(32.0)

    ref = circle_loss_ref(sp, sn, size_normed_feature)

    # Default path (single grid step; right-sized 8x128 sp block, 24x128 sn block).
    out_default = jax.block_until_ready(circle_loss(sp, sn, size_normed_feature))
    # Multi-block streaming path (grid of 3 over sn; sp active only on step 0).
    out_stream = jax.block_until_ready(
        circle_loss(sp, sn, size_normed_feature, block_rows=8))
    # Fewer valid sp elements than lanes -> exercises empty-lane accumulators.
    sp_small = sp[:50]
    ref_small = circle_loss_ref(sp_small, sn, size_normed_feature)
    out_small = jax.block_until_ready(
        circle_loss(sp_small, sn, size_normed_feature, block_rows=16))

    assert jnp.allclose(out_default, ref, rtol=1e-5, atol=1e-4), (out_default, ref)
    assert jnp.allclose(out_stream, ref, rtol=1e-5, atol=1e-4), (out_stream, ref)
    assert jnp.allclose(out_small, ref_small, rtol=1e-5, atol=1e-4), (out_small, ref_small)
    print("KERNEL_OK")
</pallas_src>

<mosaic_0001>
module attributes {stable_mosaic.version = 11 : i64} {
  func.func @_circle_loss_kernel(%arg0: i32, %arg1: memref<2xi32, #tpu.memory_space<smem>>, %arg2: memref<8x128xf32, #tpu.memory_space<vmem>>, %arg3: memref<24x128xf32, #tpu.memory_space<vmem>>, %arg4: memref<1x1xf32, #tpu.memory_space<vmem>>, %arg5: memref<1x128xf32, #tpu.memory_space<vmem>>, %arg6: memref<1x128xf32, #tpu.memory_space<vmem>>, %arg7: memref<1x128xf32, #tpu.memory_space<vmem>>, %arg8: memref<1x128xf32, #tpu.memory_space<vmem>>, %arg9: memref<24x128xi32, #tpu.memory_space<vmem>>) attributes {dimension_semantics = [#tpu.dimension_semantics<arbitrary>], iteration_bounds = array<i64: 1>, scalar_prefetch = 1 : i64, scratch_operands = 5 : i64, tpu.core_type = #tpu.core_type<tc>, window_params = [{transform_indices = @transform_0, window_bounds = array<i64: 8, 128>}, {transform_indices = @transform_1, window_bounds = array<i64: 24, 128>}, {pipeline_mode = #tpu.pipeline_mode<synchronous>, transform_indices = @transform_2, window_bounds = array<i64: 1, 1>}]} {
    %c0_i32 = arith.constant 0 : i32
    %0 = arith.cmpi eq, %arg0, %c0_i32 : i32
    %1 = arith.extui %0 : i1 to i32
    %c0_i32_0 = arith.constant 0 : i32
    %2 = arith.cmpi ne, %1, %c0_i32_0 : i32
    scf.if %2 {
      %cst = arith.constant -3.40282347E+38 : f32
      %16 = vector.broadcast %cst : f32 to vector<1x128xf32>
      %cst_5 = arith.constant 0.000000e+00 : f32
      %17 = vector.broadcast %cst_5 : f32 to vector<1x128xf32>
      %c0_6 = arith.constant 0 : index
      %c0_7 = arith.constant 0 : index
      %18 = vector.load %arg5[%c0_6, %c0_7] : memref<1x128xf32, #tpu.memory_space<vmem>>, vector<1x128xf32>
      tpu.vector_store %arg5[%c0_6, %c0_7], %16 {strides = array<i32>} : memref<1x128xf32, #tpu.memory_space<vmem>>, vector<1x128xf32>,
      %c0_8 = arith.constant 0 : index
      %c0_9 = arith.constant 0 : index
      %19 = vector.load %arg7[%c0_8, %c0_9] : memref<1x128xf32, #tpu.memory_space<vmem>>, vector<1x128xf32>
      tpu.vector_store %arg7[%c0_8, %c0_9], %16 {strides = array<i32>} : memref<1x128xf32, #tpu.memory_space<vmem>>, vector<1x128xf32>,
      %c0_10 = arith.constant 0 : index
      %c0_11 = arith.constant 0 : index
      %20 = vector.load %arg6[%c0_10, %c0_11] : memref<1x128xf32, #tpu.memory_space<vmem>>, vector<1x128xf32>
      tpu.vector_store %arg6[%c0_10, %c0_11], %17 {strides = array<i32>} : memref<1x128xf32, #tpu.memory_space<vmem>>, vector<1x128xf32>,
      %c0_12 = arith.constant 0 : index
      %c0_13 = arith.constant 0 : index
      %21 = vector.load %arg8[%c0_12, %c0_13] : memref<1x128xf32, #tpu.memory_space<vmem>>, vector<1x128xf32>
      tpu.vector_store %arg8[%c0_12, %c0_13], %17 {strides = array<i32>} : memref<1x128xf32, #tpu.memory_space<vmem>>, vector<1x128xf32>,
      %22 = tpu.iota {dimensions = array<i32: 0>} : vector<24x128xi32>
      %c128_i32 = arith.constant 128 : i32
      %23 = vector.broadcast %c128_i32 : i32 to vector<24x128xi32>
      %24 = arith.muli %22, %23 : vector<24x128xi32>
      %25 = tpu.iota {dimensions = array<i32: 1>} : vector<24x128xi32>
      %26 = arith.addi %24, %25 : vector<24x128xi32>
      %c0_14 = arith.constant 0 : index
      %c0_15 = arith.constant 0 : index
      %27 = vector.load %arg9[%c0_14, %c0_15] : memref<24x128xi32, #tpu.memory_space<vmem>>, vector<24x128xi32>
      tpu.vector_store %arg9[%c0_14, %c0_15], %26 {strides = array<i32>} : memref<24x128xi32, #tpu.memory_space<vmem>>, vector<24x128xi32>,
    } else {
    }
    %c0 = arith.constant 0 : index
    %3 = memref.load %arg1[%c0] : memref<2xi32, #tpu.memory_space<smem>>
    %c1 = arith.constant 1 : index
    %4 = memref.load %arg1[%c1] : memref<2xi32, #tpu.memory_space<smem>>
    %c1024_i32 = arith.constant 1024 : i32
    %5 = arith.muli %arg0, %c1024_i32 : i32
    %c3072_i32 = arith.constant 3072 : i32
    %6 = arith.muli %arg0, %c3072_i32 : i32
    %7 = arith.cmpi slt, %5, %3 : i32
    %8 = arith.extui %7 : i1 to i32
    %c0_i32_1 = arith.constant 0 : i32
    %9 = arith.cmpi ne, %8, %c0_i32_1 : i32
    scf.if %9 {
      %c0_5 = arith.constant 0 : index
      %c0_6 = arith.constant 0 : index
      %16 = vector.load %arg2[%c0_5, %c0_6] : memref<8x128xf32, #tpu.memory_space<vmem>>, vector<8x128xf32>
      %c0_7 = arith.constant 0 : index
      %c0_8 = arith.constant 0 : index
      %17 = vector.load %arg9[%c0_7, %c0_8] : memref<24x128xi32, #tpu.memory_space<vmem>>, vector<8x128xi32>
      %18 = arith.subi %3, %5 : i32
      %19 = vector.broadcast %18 : i32 to vector<8x128xi32>
      %20 = arith.cmpi slt, %17, %19 : vector<8x128xi32>
      %cst = arith.constant 0.000000e+00 : f32
      %21 = vector.broadcast %cst : f32 to vector<8x128xf32>
      %22 = arith.subf %21, %16 : vector<8x128xf32>
      %cst_9 = arith.constant 1.800000e+00 : f32
      %23 = vector.broadcast %cst_9 : f32 to vector<8x128xf32>
      %24 = arith.addf %22, %23 : vector<8x128xf32>
      %cst_10 = arith.constant 0.000000e+00 : f32
      %25 = vector.broadcast %cst_10 : f32 to vector<8x128xf32>
      %26 = arith.maximumf %24, %25 : vector<8x128xf32>
      %cst_11 = arith.constant 0.000000e+00 : f32
      %27 = vector.broadcast %cst_11 : f32 to vector<8x128xf32>
      %28 = arith.subf %27, %26 : vector<8x128xf32>
      %cst_12 = arith.constant 2.000000e-01 : f32
      %29 = vector.broadcast %cst_12 : f32 to vector<8x128xf32>
      %30 = arith.subf %16, %29 : vector<8x128xf32>
      %31 = arith.mulf %28, %30 : vector<8x128xf32>
      %cst_13 = arith.constant 8.000000e+01 : f32
      %32 = vector.broadcast %cst_13 : f32 to vector<8x128xf32>
      %33 = arith.mulf %31, %32 : vector<8x128xf32>
      %cst_14 = arith.constant -3.40282347E+38 : f32
      %34 = vector.broadcast %cst_14 : f32 to vector<8x128xf32>
      %35 = arith.select %20, %33, %34 : vector<8x128xi1>, vector<8x128xf32>
      %cst_15 = arith.constant dense<0xFF800000> : vector<128xf32>
      %36 = vector.multi_reduction <maximumf>, %35, %cst_15 [0] : vector<8x128xf32> to vector<128xf32>
      %37 = vector.shape_cast %36 : vector<128xf32> to vector<1x128xf32>
      %c0_16 = arith.constant 0 : index
      %c0_17 = arith.constant 0 : index
      %38 = vector.load %arg5[%c0_16, %c0_17] : memref<1x128xf32, #tpu.memory_space<vmem>>, vector<1x128xf32>
      %39 = arith.maximumf %38, %37 : vector<1x128xf32>
      %40 = arith.subf %38, %39 : vector<1x128xf32>
      %41 = math.exp %40 : vector<1x128xf32>
      %42 = vector.broadcast %39 : vector<1x128xf32> to vector<8x128xf32>
      %43 = arith.subf %33, %42 : vector<8x128xf32>
      %44 = math.exp %43 : vector<8x128xf32>
      %cst_18 = arith.constant 0.000000e+00 : f32
      %45 = vector.broadcast %cst_18 : f32 to vector<8x128xf32>
      %46 = arith.select %20, %44, %45 : vector<8x128xi1>, vector<8x128xf32>
      %c0_19 = arith.constant 0 : index
      %c0_20 = arith.constant 0 : index
      %47 = vector.load %arg6[%c0_19, %c0_20] : memref<1x128xf32, #tpu.memory_space<vmem>>, vector<1x128xf32>
      %48 = arith.mulf %47, %41 : vector<1x128xf32>
      %cst_21 = arith.constant dense<0.000000e+00> : vector<128xf32>
      %49 = vector.multi_reduction <add>, %46, %cst_21 [0] : vector<8x128xf32> to vector<128xf32>
      %50 = vector.shape_cast %49 : vector<128xf32> to vector<1x128xf32>
      %51 = arith.addf %48, %50 : vector<1x128xf32>
      %c0_22 = arith.constant 0 : index
      %c0_23 = arith.constant 0 : index
      %52 = vector.load %arg6[%c0_22, %c0_23] : memref<1x128xf32, #tpu.memory_space<vmem>>, vector<1x128xf32>
      tpu.vector_store %arg6[%c0_22, %c0_23], %51 {strides = array<i32>} : memref<1x128xf32, #tpu.memory_space<vmem>>, vector<1x128xf32>,
      %c0_24 = arith.constant 0 : index
      %c0_25 = arith.constant 0 : index
      %53 = vector.load %arg5[%c0_24, %c0_25] : memref<1x128xf32, #tpu.memory_space<vmem>>, vector<1x128xf32>
      tpu.vector_store %arg5[%c0_24, %c0_25], %39 {strides = array<i32>} : memref<1x128xf32, #tpu.memory_space<vmem>>, vector<1x128xf32>,
    } else {
    }
    %10 = arith.cmpi slt, %6, %4 : i32
    %11 = arith.extui %10 : i1 to i32
    %c0_i32_2 = arith.constant 0 : i32
    %12 = arith.cmpi ne, %11, %c0_i32_2 : i32
    scf.if %12 {
      %c0_5 = arith.constant 0 : index
      %c0_6 = arith.constant 0 : index
      %16 = vector.load %arg3[%c0_5, %c0_6] : memref<24x128xf32, #tpu.memory_space<vmem>>, vector<24x128xf32>
      %c0_7 = arith.constant 0 : index
      %c0_8 = arith.constant 0 : index
      %17 = vector.load %arg9[%c0_7, %c0_8] : memref<24x128xi32, #tpu.memory_space<vmem>>, vector<24x128xi32>
      %18 = arith.subi %4, %6 : i32
      %19 = vector.broadcast %18 : i32 to vector<24x128xi32>
      %20 = arith.cmpi slt, %17, %19 : vector<24x128xi32>
      %cst = arith.constant 8.000000e-01 : f32
      %21 = vector.broadcast %cst : f32 to vector<24x128xf32>
      %22 = arith.addf %16, %21 : vector<24x128xf32>
      %cst_9 = arith.constant 0.000000e+00 : f32
      %23 = vector.broadcast %cst_9 : f32 to vector<24x128xf32>
      %24 = arith.maximumf %22, %23 : vector<24x128xf32>
      %cst_10 = arith.constant 8.000000e-01 : f32
      %25 = vector.broadcast %cst_10 : f32 to vector<24x128xf32>
      %26 = arith.subf %16, %25 : vector<24x128xf32>
      %27 = arith.mulf %24, %26 : vector<24x128xf32>
      %cst_11 = arith.constant 8.000000e+01 : f32
      %28 = vector.broadcast %cst_11 : f32 to vector<24x128xf32>
      %29 = arith.mulf %27, %28 : vector<24x128xf32>
      %cst_12 = arith.constant -3.40282347E+38 : f32
      %30 = vector.broadcast %cst_12 : f32 to vector<24x128xf32>
      %31 = arith.select %20, %29, %30 : vector<24x128xi1>, vector<24x128xf32>
      %cst_13 = arith.constant dense<0xFF800000> : vector<128xf32>
      %32 = vector.multi_reduction <maximumf>, %31, %cst_13 [0] : vector<24x128xf32> to vector<128xf32>
      %33 = vector.shape_cast %32 : vector<128xf32> to vector<1x128xf32>
      %c0_14 = arith.constant 0 : index
      %c0_15 = arith.constant 0 : index
      %34 = vector.load %arg7[%c0_14, %c0_15] : memref<1x128xf32, #tpu.memory_space<vmem>>, vector<1x128xf32>
      %35 = arith.maximumf %34, %33 : vector<1x128xf32>
      %36 = arith.subf %34, %35 : vector<1x128xf32>
      %37 = math.exp %36 : vector<1x128xf32>
      %38 = vector.broadcast %35 : vector<1x128xf32> to vector<24x128xf32>
      %39 = arith.subf %29, %38 : vector<24x128xf32>
      %40 = math.exp %39 : vector<24x128xf32>
      %cst_16 = arith.constant 0.000000e+00 : f32
      %41 = vector.broadcast %cst_16 : f32 to vector<24x128xf32>
      %42 = arith.select %20, %40, %41 : vector<24x128xi1>, vector<24x128xf32>
      %c0_17 = arith.constant 0 : index
      %c0_18 = arith.constant 0 : index
      %43 = vector.load %arg8[%c0_17, %c0_18] : memref<1x128xf32, #tpu.memory_space<vmem>>, vector<1x128xf32>
      %44 = arith.mulf %43, %37 : vector<1x128xf32>
      %cst_19 = arith.constant dense<0.000000e+00> : vector<128xf32>
      %45 = vector.multi_reduction <add>, %42, %cst_19 [0] : vector<24x128xf32> to vector<128xf32>
      %46 = vector.shape_cast %45 : vector<128xf32> to vector<1x128xf32>
      %47 = arith.addf %44, %46 : vector<1x128xf32>
      %c0_20 = arith.constant 0 : index
      %c0_21 = arith.constant 0 : index
      %48 = vector.load %arg8[%c0_20, %c0_21] : memref<1x128xf32, #tpu.memory_space<vmem>>, vector<1x128xf32>
      tpu.vector_store %arg8[%c0_20, %c0_21], %47 {strides = array<i32>} : memref<1x128xf32, #tpu.memory_space<vmem>>, vector<1x128xf32>,
      %c0_22 = arith.constant 0 : index
      %c0_23 = arith.constant 0 : index
      %49 = vector.load %arg7[%c0_22, %c0_23] : memref<1x128xf32, #tpu.memory_space<vmem>>, vector<1x128xf32>
      tpu.vector_store %arg7[%c0_22, %c0_23], %35 {strides = array<i32>} : memref<1x128xf32, #tpu.memory_space<vmem>>, vector<1x128xf32>,
    } else {
    }
    %c0_i32_3 = arith.constant 0 : i32
    %13 = arith.cmpi eq, %arg0, %c0_i32_3 : i32
    %14 = arith.extui %13 : i1 to i32
    %c0_i32_4 = arith.constant 0 : i32
    %15 = arith.cmpi ne, %14, %c0_i32_4 : i32
    scf.if %15 {
      %c0_5 = arith.constant 0 : index
      %c0_6 = arith.constant 0 : index
      %16 = vector.load %arg7[%c0_5, %c0_6] : memref<1x128xf32, #tpu.memory_space<vmem>>, vector<1x128xf32>
      %c0_7 = arith.constant 0 : index
      %c0_8 = arith.constant 0 : index
      %17 = vector.load %arg8[%c0_7, %c0_8] : memref<1x128xf32, #tpu.memory_space<vmem>>, vector<1x128xf32>
      %cst = arith.constant dense<0xFF800000> : vector<1xf32>
      %18 = vector.multi_reduction <maximumf>, %16, %cst [1] : vector<1x128xf32> to vector<1xf32>
      %19 = vector.shape_cast %18 : vector<1xf32> to vector<1x1xf32>
      %20 = vector.broadcast %19 : vector<1x1xf32> to vector<1x128xf32>
      %21 = arith.subf %16, %20 : vector<1x128xf32>
      %22 = math.exp %21 : vector<1x128xf32>
      %23 = arith.mulf %17, %22 : vector<1x128xf32>
      %cst_9 = arith.constant dense<0.000000e+00> : vector<1xf32>
      %24 = vector.multi_reduction <add>, %23, %cst_9 [1] : vector<1x128xf32> to vector<1xf32>
      %25 = vector.shape_cast %24 : vector<1xf32> to vector<1x1xf32>
      %26 = math.log %25 : vector<1x1xf32>
      %27 = arith.addf %19, %26 : vector<1x1xf32>
      %c0_10 = arith.constant 0 : index
      %c0_11 = arith.constant 0 : index
      %28 = vector.load %arg5[%c0_10, %c0_11] : memref<1x128xf32, #tpu.memory_space<vmem>>, vector<1x128xf32>
      %c0_12 = arith.constant 0 : index
      %c0_13 = arith.constant 0 : index
      %29 = vector.load %arg6[%c0_12, %c0_13] : memref<1x128xf32, #tpu.memory_space<vmem>>, vector<1x128xf32>
      %cst_14 = arith.constant dense<0xFF800000> : vector<1xf32>
      %30 = vector.multi_reduction <maximumf>, %28, %cst_14 [1] : vector<1x128xf32> to vector<1xf32>
      %31 = vector.shape_cast %30 : vector<1xf32> to vector<1x1xf32>
      %32 = vector.broadcast %31 : vector<1x1xf32> to vector<1x128xf32>
      %33 = arith.subf %28, %32 : vector<1x128xf32>
      %34 = math.exp %33 : vector<1x128xf32>
      %35 = arith.mulf %29, %34 : vector<1x128xf32>
      %cst_15 = arith.constant dense<0.000000e+00> : vector<1xf32>
      %36 = vector.multi_reduction <add>, %35, %cst_15 [1] : vector<1x128xf32> to vector<1xf32>
      %37 = vector.shape_cast %36 : vector<1xf32> to vector<1x1xf32>
      %38 = math.log %37 : vector<1x1xf32>
      %39 = arith.addf %31, %38 : vector<1x1xf32>
      %40 = arith.addf %27, %39 : vector<1x1xf32>
      %cst_16 = arith.constant 2.000000e+01 : f32
      %41 = vector.broadcast %cst_16 : f32 to vector<1x1xf32>
      %42 = arith.cmpf ogt, %40, %41 : vector<1x1xf32>
      %cst_17 = arith.constant 2.000000e+01 : f32
      %43 = vector.broadcast %cst_17 : f32 to vector<1x1xf32>
      %44 = arith.minimumf %40, %43 : vector<1x1xf32>
      %45 = math.exp %44 : vector<1x1xf32>
      %46 = math.log1p %45 : vector<1x1xf32>
      %47 = arith.select %42, %40, %46 : vector<1x1xi1>, vector<1x1xf32>
      %c0_18 = arith.constant 0 : index
      %c0_19 = arith.constant 0 : index
      %48 = vector.load %arg4[%c0_18, %c0_19] : memref<1x1xf32, #tpu.memory_space<vmem>>, vector<1x1xf32>
      tpu.vector_store %arg4[%c0_18, %c0_19], %47 {strides = array<i32>} : memref<1x1xf32, #tpu.memory_space<vmem>>, vector<1x1xf32>,
    } else {
    }
    return
  }
  func.func @transform_0(%arg0: i32, %arg1: memref<2xi32, #tpu.memory_space<smem>>) -> (i32, i32) {
    %c0_i32 = arith.constant 0 : i32
    %0 = arith.minsi %arg0, %c0_i32 : i32
    %c0_i32_0 = arith.constant 0 : i32
    %c0_i32_1 = arith.constant 0 : i32
    return %0, %c0_i32_0 : i32, i32
  }
  func.func @transform_1(%arg0: i32, %arg1: memref<2xi32, #tpu.memory_space<smem>>) -> (i32, i32) {
    %c0_i32 = arith.constant 0 : i32
    %0 = arith.minsi %arg0, %c0_i32 : i32
    %c0_i32_0 = arith.constant 0 : i32
    %c0_i32_1 = arith.constant 0 : i32
    return %0, %c0_i32_0 : i32, i32
  }
  func.func @transform_2(%arg0: i32, %arg1: memref<2xi32, #tpu.memory_space<smem>>) -> (i32, i32) {
    %c0_i32 = arith.constant 0 : i32
    %c0_i32_0 = arith.constant 0 : i32
    %c0_i32_1 = arith.constant 0 : i32
    return %c0_i32, %c0_i32_0 : i32, i32
  }
}

</mosaic_0001>

<bundles_post_ra>
// kernel: tpu_custom_call.1
= control target key start
LH: loop header
LB: loop body
LE: loop exit
PB: predicated region body
PF: predicated region fallthrough
CT: control target
= control target key end

     0   :  { %s400_s15 = smov [#allocation8]   ;;  %s466_s0 = inlined_call_operand.hbm [shape: s32[2], index: 0, kind: input, shape index: {}]   ;;  %s467_s1 = inlined_call_operand.hbm [shape: f32[8,128], index: 1, kind: input, shape index: {}]   ;;  %s468_s2 = inlined_call_operand.hbm [shape: f32[24,128], index: 2, kind: input, shape index: {}]   ;;  %s469_s3 = inlined_call_operand.hbm [shape: f32[1,1], index: 3, kind: output, shape index: {}]  }
   0x1   :  { %s9_s14 = sshll.u32 %s466_s0, 4  ;;  %s10_s14 = int_to_ptr.hbm [resolvable:$true] %s9_s14 }
   0x2   :  { %12 = dma.hbm_to_smem %s10_s14, 16, %s400_s15, [#allocation7] }
   0x3   :  { %392 = dma.done.wait [#allocation7], 16 }
   0x4   :  { %393 = vsyncadd [#allocation7], 4294967280 }
   0x5   :  { %15 = sfence }
   0x6   :  { %16 = vsyncpa [#allocation10], 0 }
   0x7   :  { %17 = vsyncpa [#allocation13], 0 }
   0x8   :  { %18 = vsyncpa [#allocation11], 0  ;;  %s24_s18 = sshll.u32 %s467_s1, 4  ;;  %s401_s19 = smov [#allocation9]   ;;  %s25_s18 = int_to_ptr.hbm [resolvable:$true] %s24_s18 }
   0x9   :  { %s26_s20 = sshll.u32 %s401_s19, 4  ;;  %s34_s0 = sshll.u32 %s468_s2, 4  ;;  %s27_s20 = int_to_ptr.vmem [resolvable:$true] %s26_s20  ;;  %s35_s0 = int_to_ptr.hbm [resolvable:$true] %s34_s0 }
   0xa   :  { %29 = dma.hbm_to_vmem [thread:$0]  %s25_s18, 128, %s27_s20, [#allocation10]  }
   0xb   :  { %s402_s23 = smov [#allocation12]   ;;  %s403_s25 = smov 128  }
   0xc   :  { %s36_s24 = sshll.u32 %s402_s23, 4  ;;  %s404_s26 = smov 8   ;;  %s37_s24 = int_to_ptr.vmem [resolvable:$true] %s36_s24 }
   0xd   :  { %42 = dma.hbm_to_vmem [thread:$0]  %s35_s0, 384, %s37_s24, [#allocation13], %s403_s25, %s403_s25, %s404_s26  }
   0xe   :  { %394 = dma.done.wait [#allocation10], 128  }
   0xf   :  { %395 = vsyncadd [#allocation10], 4294967168 }
  0x10   :  { %396 = dma.done.wait [#allocation13], 384  }
  0x11   :  { %397 = vsyncadd [#allocation13], 4294966912  ;;  %v59_v0 = vlaneseq  ;;  %s437_s1 = sld [smem:[#allocation8]]  ;;  %v405_v1 = vmov -3.4028235e+38   ;;  %v406_v4 = vmov 0.0  }
  0x12   :  { %55 = vst [vmem:[#allocation2] sm:$0x1] %v405_v1  ;;  %s439_s27 = sld [smem:[#allocation8 + $0x1]] }
  0x13   :  { %56 = vst [vmem:[#allocation4] sm:$0x1] %v405_v1  ;;  %v60_v2 = vshrl.u32 %v59_v0, 7  ;;  %v67_v3 = vand.u32 127, %v59_v0 }
  0x14   :  { %57 = vst [vmem:[#allocation3] sm:$0x1] %v406_v4 }
  0x15   :  { %58 = vst [vmem:[#allocation5] sm:$0x1] %v406_v4  ;;  %v63_v5 = vmul.u32 128, %v60_v2  ;;  %v61_v6 = vadd.s32 8, %v60_v2  ;;  %v62_v7 = vadd.s32 16, %v60_v2 }
  0x17   :  { %v68_v8 = vadd.s32 %v67_v3, %v63_v5  ;;  %v64_v9 = vmul.u32 128, %v61_v6  ;;  %v65_v10 = vmul.u32 128, %v62_v7  ;;  %p269_p0 = scmp.le.s32.totalorder %s437_s1, 0 }
  0x19   :  { %71 = vst [vmem:[#allocation6 + $0x10] sm:$0xff] %v68_v8  ;;  %v69_v11 = vadd.s32 %v67_v3, %v64_v9  ;;  %v70_v12 = vadd.s32 %v67_v3, %v65_v10  ;;  %81 = sbr.rel (%p269_p0) target bundleno = 87 (0x57), region = 25 }
  0x1b   :  { %72 = vst [vmem:[#allocation6] sm:$0xff] %v69_v11 }
  0x1c   :  { %73 = vst [vmem:[#allocation6 + $0x8] sm:$0xff] %v70_v12 }
  0x1e   :  { %v82_v13 = vld [vmem:[#allocation9] sm:$0xff]  ;;  %v85_v19 = vstv %s437_s1 }
  0x1f   :  { %v87_v14 = vsub.f32 0.0, %v82_v13  ;;  %v270_v17 = vadd.f32 -0.2, %v82_v13  ;;  %v101_v30 = vld [vmem:[#allocation2] sm:$0x1] }
  0x20   :  { %v83_v18 = vld [vmem:[#allocation6 + $0x10] sm:$0xff]  ;;  %v113_v44 = vld [vmem:[#allocation3] sm:$0x1] }
  0x21   :  { %v88_v15 = vadd.f32 1.8, %v87_v14  ;;  %vm443_vm0 = vcmp.lt.s32.totalorder %v83_v18, %v85_v19 }
  0x23   :  { %v89_v16 = vmax.f32 %v88_v15, 0.0 }
  0x25   :  { %v90_v20 = vsub.f32 0.0, %v89_v16 }
  0x27   :  { %v92_v21 = vmul.f32 %v270_v17, %v90_v20 }
  0x29   :  { %v93_v23 = vmul.f32 80.0, %v92_v21 }
  0x2b   :  { %v94_v24 = vsel %vm443_vm0, %v93_v23, -3.4028235e+38 }
  0x2c   :  { %v95_v25 = vrot.slane %v94_v24, 4 }
  0x2e   :  { %v96_v26 = vmax.f32 %v94_v24, %v95_v25 }
  0x30   :  { %v97_v27 = vrot.slane %v96_v26, 2 }
  0x32   :  { %v98_v28 = vmax.f32 %v96_v26, %v97_v27 }
  0x34   :  { %v99_v29 = vrot.slane %v98_v28, 1 }
  0x36   :  { %v100_v31 = vmax.f32 %v98_v28, %v99_v29 }
  0x38   :  { %v102_v32 = vmax.f32 %v101_v30, %v100_v31 }
  0x3a   :  { %v107_v33 = vperm.slane %v102_v32, 0  ;;  %123 = vst [vmem:[#allocation2] sm:$0x1] %v102_v32  ;;  %v103_v36 = vsub.f32 %v101_v30, %v102_v32 }
  0x3c   :  { %v109_v34 = vsub.f32 %v93_v23, %v107_v33  ;;  %v104_v37 = vmul.f32 1.442695, %v103_v36 }
  0x3e   :  { %v110_v35 = vmul.f32 1.442695, %v109_v34 }
  0x40   :  { %284 = vpow2.f32 %v110_v35 }
  0x41   :  { %286 = vpow2.f32 %v104_v37 }
  0x46   :  { %v285_v38 = vpop.eup %284 }
  0x47   :  { %v112_v39 = vsel %vm443_vm0, %v285_v38, 0.0  ;;  %v287_v43 = vpop.eup %286 }
  0x48   :  { %v115_v40 = vrot.slane %v112_v39, 4  ;;  %v114_v46 = vmul.f32 %v287_v43, %v113_v44 }
  0x4a   :  { %v116_v41 = vadd.f32 %v115_v40, %v112_v39 }
  0x4c   :  { %v117_v42 = vrot.slane %v116_v41, 2 }
  0x4e   :  { %v118_v45 = vadd.f32 %v117_v42, %v116_v41 }
  0x50   :  { %v119_v47 = vrot.slane %v118_v45, 1 }
  0x52   :  { %v120_v48 = vadd.f32 %v119_v47, %v118_v45 }
  0x54   :  { %v121_v49 = vadd.f32 %v120_v48, %v114_v46 }
  0x56   :  { %122 = vst [vmem:[#allocation3] sm:$0x1] %v121_v49 }
  0x57 PF:  { %p272_p1 = scmp.le.s32.totalorder %s439_s27, 0 }
  0x59   :  { %127 = sbr.rel (%p272_p1) target bundleno = 156 (0x9c), region = 29 }
  0x5e   :  { %v128_v50 = vld [vmem:[#allocation12] sm:$0xff]  ;;  %v129_v51 = vld [vmem:[#allocation12 + $0x8] sm:$0xff]  ;;  %v130_v52 = vld [vmem:[#allocation12 + $0x10] sm:$0xff]  ;;  %v135_v56 = vstv %s439_s27 }
  0x5f   :  { %v139_v53 = vadd.f32 0.8, %v128_v50  ;;  %v140_v54 = vadd.f32 0.8, %v129_v51  ;;  %v131_v55 = vld [vmem:[#allocation6 + $0x10] sm:$0xff]  ;;  %v132_v60 = vld [vmem:[#allocation6] sm:$0xff] }
  0x60   :  { %v141_v57 = vadd.f32 0.8, %v130_v52  ;;  %v273_v59 = vadd.f32 -0.8, %v128_v50  ;;  %v274_v62 = vadd.f32 -0.8, %v129_v51  ;;  %vm136_vm1 = vcmp.lt.s32.totalorder %v131_v55, %v135_v56 }
  0x61   :  { %v142_v58 = vmax.f32 %v139_v53, 0.0  ;;  %v143_v61 = vmax.f32 %v140_v54, 0.0  ;;  %v275_v63 = vadd.f32 -0.8, %v130_v52  ;;  %v133_v0 = vld [vmem:[#allocation6 + $0x8] sm:$0xff]  ;;  %vm137_vm2 = vcmp.lt.s32.totalorder %v132_v60, %v135_v56 }
  0x62   :  { %v144_v1 = vmax.f32 %v141_v57, 0.0  ;;  %vm138_vm3 = vcmp.lt.s32.totalorder %v133_v0, %v135_v56  ;;  %v165_v18 = vld [vmem:[#allocation4] sm:$0x1]  ;;  %v185_v42 = vld [vmem:[#allocation5] sm:$0x1] }
  0x63   :  { %v148_v2 = vmul.f32 %v273_v59, %v142_v58  ;;  %v149_v3 = vmul.f32 %v274_v62, %v143_v61 }
  0x64   :  { %v150_v4 = vmul.f32 %v275_v63, %v144_v1 }
  0x65   :  { %v151_v5 = vmul.f32 80.0, %v148_v2  ;;  %v152_v6 = vmul.f32 80.0, %v149_v3 }
  0x66   :  { %v153_v7 = vmul.f32 80.0, %v150_v4 }
  0x67   :  { %v154_v8 = vsel %vm136_vm1, %v151_v5, -3.4028235e+38  ;;  %v155_v9 = vsel %vm137_vm2, %v152_v6, -3.4028235e+38 }
  0x68   :  { %v156_v10 = vsel %vm138_vm3, %v153_v7, -3.4028235e+38  ;;  %v157_v11 = vmax.f32 %v154_v8, %v155_v9 }
  0x6a   :  { %v158_v12 = vmax.f32 %v157_v11, %v156_v10 }
  0x6c   :  { %v159_v13 = vrot.slane %v158_v12, 4 }
  0x6e   :  { %v160_v14 = vmax.f32 %v158_v12, %v159_v13 }
  0x70   :  { %v161_v15 = vrot.slane %v160_v14, 2 }
  0x72   :  { %v162_v16 = vmax.f32 %v160_v14, %v161_v15 }
  0x74   :  { %v163_v17 = vrot.slane %v162_v16, 1 }
  0x76   :  { %v164_v19 = vmax.f32 %v162_v16, %v163_v17 }
  0x78   :  { %v166_v20 = vmax.f32 %v165_v18, %v164_v19 }
  0x7a   :  { %v171_v21 = vperm.slane %v166_v20, 0  ;;  %197 = vst [vmem:[#allocation4] sm:$0x1] %v166_v20  ;;  %v167_v28 = vsub.f32 %v165_v18, %v166_v20 }
  0x7c   :  { %v173_v22 = vsub.f32 %v151_v5, %v171_v21  ;;  %v174_v23 = vsub.f32 %v152_v6, %v171_v21  ;;  %v175_v24 = vsub.f32 %v153_v7, %v171_v21  ;;  %v168_v33 = vmul.f32 1.442695, %v167_v28 }
  0x7e   :  { %v176_v25 = vmul.f32 1.442695, %v173_v22  ;;  %v178_v26 = vmul.f32 1.442695, %v174_v23  ;;  %v180_v27 = vmul.f32 1.442695, %v175_v24 }
  0x80   :  { %288 = vpow2.f32 %v176_v25 }
  0x81   :  { %290 = vpow2.f32 %v178_v26 }
  0x82   :  { %292 = vpow2.f32 %v180_v27 }
  0x83   :  { %294 = vpow2.f32 %v168_v33 }
  0x86   :  { %v289_v29 = vpop.eup %288 }
  0x87   :  { %v291_v30 = vpop.eup %290  ;;  %v182_v31 = vsel %vm136_vm1, %v289_v29, 0.0 }
  0x88   :  { %v293_v32 = vpop.eup %292  ;;  %v183_v34 = vsel %vm137_vm2, %v291_v30, 0.0 }
  0x89   :  { %v184_v35 = vsel %vm138_vm3, %v293_v32, 0.0  ;;  %v187_v36 = vadd.f32 %v183_v34, %v182_v31  ;;  %v295_v41 = vpop.eup %294 }
  0x8a   :  { %v186_v44 = vmul.f32 %v295_v41, %v185_v42 }
  0x8b   :  { %v188_v37 = vadd.f32 %v187_v36, %v184_v35 }
  0x8d   :  { %v189_v38 = vrot.slane %v188_v37, 4 }
  0x8f   :  { %v190_v39 = vadd.f32 %v189_v38, %v188_v37 }
  0x91   :  { %v191_v40 = vrot.slane %v190_v39, 2 }
  0x93   :  { %v192_v43 = vadd.f32 %v191_v40, %v190_v39 }
  0x95   :  { %v193_v45 = vrot.slane %v192_v43, 1 }
  0x97   :  { %v194_v46 = vadd.f32 %v193_v45, %v192_v43 }
  0x99   :  { %v195_v47 = vadd.f32 %v194_v46, %v186_v44 }
  0x9b   :  { %196 = vst [vmem:[#allocation5] sm:$0x1] %v195_v47 }
  0x9c PF:  { %v201_v48 = vld [vmem:[#allocation4] sm:$0x1]  ;;  %vm203_vm4 = vcmask 1040384   ;;  %v217_v50 = vld [vmem:[#allocation2] sm:$0x1]  ;;  %s407_s2 = smov [#allocation14]  }
  0x9d   :  { %v204_v49 = vsel %vm203_vm4, %v201_v48, -inf  ;;  %v219_v51 = vsel %vm203_vm4, %v217_v50, -inf  ;;  %v218_v62 = vld [vmem:[#allocation3] sm:$0x1]  ;;  %s254_s28 = sshll.u32 %s407_s2, 4  ;;  %s256_s4 = sshll.u32 %s469_s3, 4  ;;  %s255_s28 = int_to_ptr.vmem [resolvable:$true] %s254_s28  ;;  %s257_s4 = int_to_ptr.hbm [resolvable:$true] %s256_s4 }
  0x9e   :  { %205 = vmax.xlane.f32.xlu0 %v204_v49  ;;  %vm247_vm6 = vcmask 0  }
  0xa2   :  { %v202_v57 = vld [vmem:[#allocation5] sm:$0x1] }
  0xa6   :  { %220 = vmax.xlane.f32.xlu0 %v219_v51 }
 0x111   :  { %v206_v52 = vpop.xlane.xlu0 %205 }
 0x112   :  { %v207_v53 = vsub.f32 %v201_v48, %v206_v52 }
 0x114   :  { %v208_v54 = vmul.f32 1.442695, %v207_v53 }
 0x116   :  { %296 = vpow2.f32 %v208_v54 }
 0x119   :  { %v221_v55 = vpop.xlane.xlu0 %220 }
 0x11a   :  { %v222_v56 = vsub.f32 %v217_v50, %v221_v55 }
 0x11c   :  { %v297_v58 = vpop.eup %296  ;;  %v223_v59 = vmul.f32 1.442695, %v222_v56 }
 0x11d   :  { %v210_v60 = vmul.f32 %v297_v58, %v202_v57 }
 0x11e   :  { %298 = vpow2.f32 %v223_v59 }
 0x11f   :  { %v211_v61 = vsel %vm203_vm4, %v210_v60, 0.0 }
 0x120   :  { %212 = vadd.xlane.f32.xlu1 %v211_v61 }
 0x124   :  { %v299_v63 = vpop.eup %298 }
 0x125   :  { %v225_v0 = vmul.f32 %v299_v63, %v218_v62 }
 0x127   :  { %v226_v1 = vsel %vm203_vm4, %v225_v0, 0.0 }
 0x128   :  { %227 = vadd.xlane.f32.xlu1 %v226_v1 }
 0x193   :  { %v213_v2 = vpop.xlane.xlu1 %212 }
 0x194   :  { %300 = vlog2.f32 %v213_v2 }
 0x19a   :  { %v301_v4 = vpop.eup %300 }
 0x19b   :  { %v228_v3 = vpop.xlane.xlu1 %227  ;;  %v215_v5 = vmul.f32 0.6931472, %v301_v4 }
 0x19c   :  { %302 = vlog2.f32 %v228_v3 }
 0x19d   :  { %v216_v8 = vadd.f32 %v215_v5, %v206_v52 }
 0x1a2   :  { %v303_v6 = vpop.eup %302 }
 0x1a3   :  { %v230_v7 = vmul.f32 0.6931472, %v303_v6 }
 0x1a5   :  { %v231_v9 = vadd.f32 %v230_v7, %v221_v55 }
 0x1a7   :  { %v232_v10 = vadd.f32 %v231_v9, %v216_v8 }
 0x1a9   :  { %v234_v11 = vmin.f32 %v232_v10, 20.0  ;;  %vm233_vm7 = vcmp.gt.f32.partialorder %v232_v10, 20.0 }
 0x1ab   :  { %v235_v12 = vmul.f32 1.442695, %v234_v11 }
 0x1ad   :  { %304 = vpow2.f32 %v235_v12 }
 0x1b3   :  { %v305_v13 = vpop.eup %304 }
 0x1b4   :  { %v237_v14 = vadd.f32 1.0, %v305_v13  ;;  %v240_v15 = vmul.f32 -0.5, %v305_v13  ;;  %v243_v17 = vand.u32 2147483647, %v305_v13 }
 0x1b6   :  { %306 = vlog2.f32 %v237_v14  ;;  %v241_v16 = vadd.f32 1.0, %v240_v15  ;;  %vm244_vm5 = vcmp.lt.f32.partialorder %v243_v17, 0.0004427343 }
 0x1b8   :  { %v242_v20 = vmul.f32 %v305_v13, %v241_v16 }
 0x1bc   :  { %v307_v18 = vpop.eup %306 }
 0x1bd   :  { %v239_v19 = vmul.f32 0.6931472, %v307_v18 }
 0x1bf   :  { %v245_v21 = vsel %vm244_vm5, %v242_v20, %v239_v19 }
 0x1c0   :  { %v246_v22 = vsel %vm233_vm7, %v232_v10, %v245_v21 }
 0x1c1   :  { %248 = vst.msk [vmem:[#allocation14] sm:$0x1] %vm247_vm6, %v246_v22 }
 0x1c2   :  { %259 = dma.vmem_to_hbm [thread:$0]  %s255_s28, 16, %s257_s4, [#allocation11]  }
 0x1c3   :  { %398 = dma.done.wait [#allocation11], 16  }
 0x1c4   :  { %399 = vsyncadd [#allocation11], 4294967280 }
 0x1c5   :  { %264 = vsyncpa [#allocation10], 1 }
 0x1c6   :  { %265 = vsyncpa [#allocation13], 1 }
 0x1c7   :  { %266 = vsyncpa [#allocation11], 1 }

</bundles_post_ra>
